<compile_context>
chip_gen: v6e
topology: v6e:2x2x1
jax: 0.10.0
libtpu: 0.0.40
codegen_flags: <defaults>
</compile_context>

<pallas_src>
import jax
import jax.numpy as jnp
from jax.experimental import pallas as pl
from jax.experimental.pallas import tpu as pltpu

_MIB = 1024 * 1024


def _vmem_capacity_bytes():
    try:
        return int(pltpu.get_tpu_info().vmem_capacity_bytes)
    except Exception:
        return 64 * _MIB  # conservative fallback (v7x per-TC VMEM)


def _diag_bias_kernel(x_ref, w_ref, b_ref, o_ref):
    # x_ref: (tn, tf); w_ref/b_ref: (1, tf) float32, broadcast along rows.
    xf = x_ref[...].astype(jnp.float32)
    o_ref[...] = (xf * w_ref[...] + b_ref[...]).astype(o_ref.dtype)


def _diag_kernel(x_ref, w_ref, o_ref):
    o_ref[...] = (x_ref[...].astype(jnp.float32) * w_ref[...]).astype(o_ref.dtype)


def linear_diag(x, weight, bias=None, *, tn=None, tf=None, block_bytes=None):
    """out = x * weight (+ bias), broadcasting (F,) params over rows of (N, F) x."""
    assert x.ndim == 2
    N, F = x.shape
    assert weight.shape == (F,)
    itemsize = jnp.dtype(x.dtype).itemsize
    sub = max(8, 32 // itemsize)  # native sublane multiple: 8 f32, 16 bf16, 32 int8/fp8

    vmem_cap = _vmem_capacity_bytes()
    if block_bytes is None:
        # ~8 MiB x-blocks on v7x (64 MiB VMEM), 16 MiB on v5e/v6e (128 MiB VMEM).
        block_bytes = min(16 * _MIB, vmem_cap // 8)

    # ---- Feature (lane) tile -------------------------------------------------
    # Prefer full rows (tf = F): contiguous HBM DMAs, no masked lane edge, and the
    # (1, F) params get a constant block index (DMA'd once). Only cap the lane
    # width when F is so large that full rows would leave < ~256 rows per block.
    if tf is None:
        implied_tn = block_bytes // max(1, F * itemsize)
        tf = F if implied_tn >= 256 else 2048
    if tf >= F:
        tf = F                                    # full dim -> no divisibility constraint
    else:
        tf = max(128, (tf // 128) * 128)          # lane-dense, multiple of 128

    # ---- Row (sublane) tile ----------------------------------------------------
    if tn is None:
        tn = max(sub, block_bytes // max(1, tf * itemsize))
    if tn >= N:
        tn = N
    else:
        tn = max(sub, (tn // sub) * sub)
    # Guarantee >= 2 row blocks so both v7x TensorCores get work (no-op elsewhere).
    if tn > N // 2 and N >= 2 * sub:
        tn = max(sub, ((N // 2) // sub) * sub)

    # ---- VMEM budget: double-buffered x + out tiles, f32 params, f32-temp headroom.
    n_params = 1 if bias is None else 2
    per_x = tn * tf * itemsize
    per_out = tn * tf * itemsize
    per_param = tf * 4
    f32_tmp = tn * tf * 4
    vmem_limit = int(2 * per_x + 2 * per_out + 2 * n_params * per_param
                     + f32_tmp + (2 << 20))
    vmem_limit = min(vmem_limit, (vmem_cap * 9) // 10)

    w2 = weight.astype(jnp.float32).reshape(1, F)
    args = [x, w2]
    if bias is None:
        kernel = _diag_kernel
    else:
        assert bias.shape == (F,)
        args.append(bias.astype(jnp.float32).reshape(1, F))
        kernel = _diag_bias_kernel

    if tf == F:
        # 1-D grid over rows; param block index is constant -> copied exactly once.
        grid = (pl.cdiv(N, tn),)
        x_spec = pl.BlockSpec((tn, F), lambda i: (i, 0))
        p_spec = pl.BlockSpec((1, F), lambda i: (0, 0))
        out_spec = pl.BlockSpec((tn, F), lambda i: (i, 0))
        dim_sem = ("parallel",)
    else:
        # Feature axis is the OUTER (slow) grid axis so the weight/bias block index
        # changes only nF times instead of every grid step (no per-step param re-DMA).
        grid = (pl.cdiv(F, tf), pl.cdiv(N, tn))
        x_spec = pl.BlockSpec((tn, tf), lambda j, i: (i, j))
        p_spec = pl.BlockSpec((1, tf), lambda j, i: (0, j))
        out_spec = pl.BlockSpec((tn, tf), lambda j, i: (i, j))
        dim_sem = ("parallel", "parallel")

    in_specs = [x_spec, p_spec] + ([p_spec] if bias is not None else [])

    return pl.pallas_call(
        kernel,
        out_shape=jax.ShapeDtypeStruct((N, F), x.dtype),
        grid_spec=pltpu.PrefetchScalarGridSpec(
            num_scalar_prefetch=0,
            grid=grid,
            in_specs=in_specs,
            out_specs=out_spec,
        ),
        compiler_params=pltpu.CompilerParams(
            dimension_semantics=dim_sem,
            vmem_limit_bytes=vmem_limit,
        ),
    )(*args)


if __name__ == "__main__":
    key = jax.random.PRNGKey(0)
    kx, kw, kb, kx2, kx3 = jax.random.split(key, 5)

    # Primary test: 2-D input (N, num_features), matching LinearDiag.forward.
    N, F = 16, 128
    x = jax.random.normal(kx, (N, F), dtype=jnp.float32)
    # LinearDiag init: weight=1, bias=0; perturb deterministically so the test is non-trivial.
    weight = jnp.ones((F,), jnp.float32) + 0.1 * jax.random.normal(kw, (F,), jnp.float32)
    bias = 0.1 * jax.random.normal(kb, (F,), jnp.float32)

    out = jax.block_until_ready(linear_diag(x, weight, bias))
    ref = x * weight[None, :] + bias[None, :]
    assert out.shape == (N, F) and out.dtype == x.dtype
    assert jnp.allclose(out, ref, atol=1e-6, rtol=1e-6)

    # bias=False path (LinearDiag default): no zero-bias buffer is built or DMA'd.
    out_nb = jax.block_until_ready(linear_diag(x, weight, None))
    assert jnp.allclose(out_nb, x * weight[None, :], atol=1e-6, rtol=1e-6)

    # Exercise the 2-D tiled grid (feature axis outer) with ragged blocks on both axes.
    N2, F2 = 300, 640
    x2 = jax.random.normal(kx2, (N2, F2), dtype=jnp.float32)
    w2 = jnp.full((F2,), 0.5, jnp.float32)
    b2 = jnp.full((F2,), 0.25, jnp.float32)
    out2 = jax.block_until_ready(linear_diag(x2, w2, b2, tn=128, tf=256))
    assert jnp.allclose(out2, x2 * 0.5 + 0.25, atol=1e-6, rtol=1e-6)

    # bf16 input with f32 params: math is done in f32 in-kernel, output cast to bf16.
    N3, F3 = 300, 512
    x3 = jax.random.normal(kx3, (N3, F3), dtype=jnp.float32).astype(jnp.bfloat16)
    w3 = jnp.full((F3,), 1.5, jnp.float32)
    b3 = jnp.full((F3,), 0.125, jnp.float32)
    out3 = jax.block_until_ready(linear_diag(x3, w3, b3))
    ref3 = (x3.astype(jnp.float32) * 1.5 + 0.125).astype(jnp.bfloat16)
    assert out3.dtype == jnp.bfloat16
    assert jnp.allclose(out3.astype(jnp.float32), ref3.astype(jnp.float32),
                        atol=1e-2, rtol=1e-2)

    print("KERNEL_OK")
</pallas_src>

<mosaic_0001>
module attributes {stable_mosaic.version = 11 : i64} {
  func.func @_diag_bias_kernel(%arg0: i32, %arg1: memref<8x128xf32, #tpu.memory_space<vmem>>, %arg2: memref<1x128xf32, #tpu.memory_space<vmem>>, %arg3: memref<1x128xf32, #tpu.memory_space<vmem>>, %arg4: memref<8x128xf32, #tpu.memory_space<vmem>>) attributes {dimension_semantics = [#tpu.dimension_semantics<parallel>], iteration_bounds = array<i64: 2>, scalar_prefetch = 0 : i64, scratch_operands = 0 : i64, tpu.core_type = #tpu.core_type<tc>, window_params = [{transform_indices = @transform_0, window_bounds = array<i64: 8, 128>}, {pipeline_mode = #tpu.pipeline_mode<synchronous>, transform_indices = @transform_1, window_bounds = array<i64: 1, 128>}, {pipeline_mode = #tpu.pipeline_mode<synchronous>, transform_indices = @transform_2, window_bounds = array<i64: 1, 128>}, {transform_indices = @transform_3, window_bounds = array<i64: 8, 128>}]} {
    %c0 = arith.constant 0 : index
    %c0_0 = arith.constant 0 : index
    %0 = vector.load %arg1[%c0, %c0_0] : memref<8x128xf32, #tpu.memory_space<vmem>>, vector<8x128xf32>
    %c0_1 = arith.constant 0 : index
    %c0_2 = arith.constant 0 : index
    %1 = vector.load %arg2[%c0_1, %c0_2] : memref<1x128xf32, #tpu.memory_space<vmem>>, vector<1x128xf32>
    %2 = vector.broadcast %1 : vector<1x128xf32> to vector<8x128xf32>
    %3 = arith.mulf %0, %2 : vector<8x128xf32>
    %c0_3 = arith.constant 0 : index
    %c0_4 = arith.constant 0 : index
    %4 = vector.load %arg3[%c0_3, %c0_4] : memref<1x128xf32, #tpu.memory_space<vmem>>, vector<1x128xf32>
    %5 = vector.broadcast %4 : vector<1x128xf32> to vector<8x128xf32>
    %6 = arith.addf %3, %5 : vector<8x128xf32>
    %c0_5 = arith.constant 0 : index
    %c0_6 = arith.constant 0 : index
    %7 = vector.load %arg4[%c0_5, %c0_6] : memref<8x128xf32, #tpu.memory_space<vmem>>, vector<8x128xf32>
    tpu.vector_store %arg4[%c0_5, %c0_6], %6 {strides = array<i32>} : memref<8x128xf32, #tpu.memory_space<vmem>>, vector<8x128xf32>,
    return
  }
  func.func @transform_0(%arg0: i32) -> (i32, i32) {
    %c0_i32 = arith.constant 0 : i32
    %c0_i32_0 = arith.constant 0 : i32
    return %arg0, %c0_i32 : i32, i32
  }
  func.func @transform_1(%arg0: i32) -> (i32, i32) {
    %c0_i32 = arith.constant 0 : i32
    %c0_i32_0 = arith.constant 0 : i32
    %c0_i32_1 = arith.constant 0 : i32
    return %c0_i32, %c0_i32_0 : i32, i32
  }
  func.func @transform_2(%arg0: i32) -> (i32, i32) {
    %c0_i32 = arith.constant 0 : i32
    %c0_i32_0 = arith.constant 0 : i32
    %c0_i32_1 = arith.constant 0 : i32
    return %c0_i32, %c0_i32_0 : i32, i32
  }
  func.func @transform_3(%arg0: i32) -> (i32, i32) {
    %c0_i32 = arith.constant 0 : i32
    %c0_i32_0 = arith.constant 0 : i32
    return %arg0, %c0_i32 : i32, i32
  }
}

</mosaic_0001>

<bundles_post_ra>
// kernel: tpu_custom_call.1
= control target key start
LH: loop header
LB: loop body
LE: loop exit
PB: predicated region body
PF: predicated region fallthrough
CT: control target
= control target key end

     0   :  { %8 = vsyncpa [#allocation3], 0  ;;  %s611_s0 = inlined_call_operand.hbm [shape: f32[16,128], index: 0, kind: input, shape index: {}]   ;;  %s612_s1 = inlined_call_operand.vmem [shape: f32[1,128], index: 1, kind: input, shape index: {}]   ;;  %s613_s2 = inlined_call_operand.vmem [shape: f32[1,128], index: 2, kind: input, shape index: {}]   ;;  %s614_s3 = inlined_call_operand.hbm [shape: f32[16,128], index: 3, kind: output, shape index: {}]  }
   0x1   :  { %10 = vsyncpa [#allocation3 + $0x1], 0 }
   0x2   :  { %11 = vsyncpa [#allocation4], 0 }
   0x3   :  { %13 = vsyncpa [#allocation4 + $0x1], 0  ;;  %s464_s12 = smov 0   ;;  %s466_s13 = smov 0  }
   0x4   :  { %s468_s14 = smov 0   ;;  %s470_s15 = smov 0  }
   0x5 LB: > { %s485_s16 = sadd.s32 4294967295, %s440_s15   ;;  %s288_s17 = sadd.s32 4294967294, %s440_s15   ;;  %s440_s15 = sphi %s470_s15, %s631_s15   ;;  %s436_s14 = sphi %s468_s14, %s630_s14   ;;  %s432_s13 = sphi %s466_s13, %s629_s13   ;;  %s428_s12 = sphi %s464_s12, %s628_s12  }
   0x6   : > { %s489_s18 = sadd.s32 1, %s440_s15   ;;  %s26_s19 = sadd.s32 1, %s436_s14 }
   0x7   : > { %s23_s20 = ssub.s32 %s440_s15, %s489_s18  ;;  %p33_p0 = scmp.ne.s32.totalorder %s436_s14, %s432_s13 }
   0x8   : > { %p24_p1 = scmp.eq.s32.totalorder %s23_s20, 0  ;;  %p34_p2 = scmp.eq.s32.totalorder %s440_s15, 0 }
   0x9   : > { %p39_p3 = scmp.ne.s32.totalorder %s432_s13, %s428_s12  ;;  %p40_p4 = scmp.eq.s32.totalorder %s485_s16, 0 }
   0xa   : > { %s501_s21 = scalar_select %p24_p1, %s436_s14, %s26_s19  }
   0xb   : > { %p503_p5 = por %p34_p2, %p33_p0  ;;  %p507_p6 = por %p40_p4, %p39_p3 }
   0xc   : > { %p105_p7 = scmp.eq.s32.totalorder %s485_s16, 1  ;;  %p111_p8 = scmp.eq.s32.totalorder %s288_s17, 1 }
   0xd   : > { %s618_s23 = scalar_select %p507_p6, 1, 0 }
   0xe   : > { %p314_p10 = scmp.lt.s32.totalorder %s440_s15, 2  ;;  %p514_p11 = por %p105_p7, %p33_p0 }
   0xf   : > { %p518_p12 = por %p111_p8, %p39_p3  ;;  %s137_s26 = sand.u32 1, %s436_s14  }
  0x10   : > { %s619_s24 = scalar_select %p514_p11, 1, 0 }
  0x11   : > { %s620_s25 = scalar_select %p518_p12, 1, 0 }
  0x12   : > { %s292_s27 = sshll.u32 %s440_s15, 7  ;;  %s291_s28 = sshll.u32 %s137_s26, 3 }
  0x13   : > { %s527_s4 = scalar_lea.hbm %s611_s0, %s292_s27  ;;  %s141_s5 = scalar_lea.vmem [#allocation2], %s291_s28 }
  0x14   : > { %s148_s6 = sshll.u32 %s141_s5, 4  ;;  %p531_p13 = pnand %p314_p10, %p503_p5  ;;  %s535_s6 = int_to_ptr.vmem [resolvable:$true] %s148_s6 }
  0x15   : > { %s138_s8 = scalar_lea.sflag [#allocation3], %s137_s26  ;;  %s348_s9 = scalar_lea.hbm %s527_s4, 128 }
  0x16   : > { %p349_p2 = scmp.ne.s32.totalorder %s527_s4, %s348_s9  ;;  %p350_p3 = pneg %p531_p13 }
  0x17   : > { %s353_s17 = scalar_lea.hbm %s611_s0, 256  ;;  %p354_p5 = scmp.lt.s32.totalorder %s527_s4, %s611_s0 }
  0x18   : > { %p351_p4 = pnand %p350_p3, %p349_p2  ;;  %p355_p8 = scmp.lt.s32.totalorder %s353_s17, %s348_s9 }
  0x1a   : > { %p352_p7 = pneg %p351_p4  ;;  %p356_p10 = por %p355_p8, %p354_p5 }
  0x1c   : > { %p357_p9 = pnand %p356_p10, %p352_p7 }
  0x1e   : > { %360 = shalt.err (!%p357_p9)
}
  0x1f   : > { %s361_s22 = scalar_lea.vmem %s535_s6, 128  ;;  %s442_s26 = smov [#allocation2]  }
  0x20   : > { %p362_p0 = scmp.ne.s32.totalorder %s535_s6, %s361_s22  ;;  %s366_s27 = sshll.u32 %s442_s26, 4  ;;  %s367_s27 = int_to_ptr.vmem [resolvable:$false] %s366_s27 }
  0x21   : > { %s368_s28 = scalar_lea.vmem %s367_s27, 256  ;;  %p369_p4 = scmp.lt.s32.totalorder %s535_s6, %s367_s27 }
  0x22   : > { %p364_p1 = pnand %p362_p0, %p350_p3  ;;  %p370_p12 = scmp.lt.s32.totalorder %s368_s28, %s361_s22 }
  0x24   : > { %p365_p2 = pneg %p364_p1  ;;  %p371_p11 = por %p370_p12, %p369_p4 }
  0x26   : > { %p372_p6 = pnand %p371_p11, %p365_p2 }
  0x28   : > { %375 = shalt.err (!%p372_p6)
}
  0x29   : > { %309 = dma.hbm_to_vmem [thread:$0]  (!%p531_p13), %s527_s4, 128, %s535_s6, %s138_s8  }
  0x2a   : > { %p622_p9 = scmp.lt.s32.totalorder %s440_s15, 3  ;;  %p623_p7 = scmp.ge.s32.totalorder %s440_s15, 1 }
  0x2c   : > { %p154_p0 = pnand %p623_p7, %p622_p9 }
  0x2d   : > { %s562_s29 = sand.u32 (!%p154_p0), 1, %s432_s13   ;;  %p624_p6 = scmp.ne.s32.totalorder (!%p154_p0), %s618_s23, 0 }
  0x2e   : > { %157 = sbr.rel (%p154_p0) target bundleno = 77 (0x4d), region = 32  ;;  %s294_s30 = sshll.u32 (!%p154_p0), %s562_s29, 3 }
  0x2f   : > { %s160_s5 = scalar_lea.sflag (!%p154_p0), [#allocation3], %s562_s29  ;;  %s163_s9 = scalar_lea.vmem (!%p154_p0), [#allocation2], %s294_s30 }
  0x33   : > { %419 = dma.done.wait (%p624_p6), %s160_s5, 128  }
  0x34   : > { %421 = vsyncadd (%p624_p6), %s160_s5, 4294967168  ;;  %s185_s4 = scalar_lea.vmem [#allocation5], %s294_s30  ;;  %v186_v0 = vld [vmem:[%s163_s9] sm:$0xff]  ;;  %s299_s17 = sshll.u32 %s485_s16, 7 }
  0x35   : > { %s218_s6 = sshll.u32 %s185_s4, 4  ;;  %v296_v1 = vld [vmem:[%s612_s1] ss:$0 sm:$0xff]  ;;  %s216_s20 = scalar_lea.hbm %s614_s3, %s299_s17  ;;  %s219_s6 = int_to_ptr.vmem [resolvable:$true] %s218_s6 }
  0x36   : > { %v297_v2 = vld [vmem:[%s613_s2] ss:$0 sm:$0xff]  ;;  %v194_v3 = vmul.f32 %v296_v1, %v186_v0  ;;  %s205_s22 = scalar_lea.sflag [#allocation4], %s562_s29  ;;  %s376_s26 = scalar_lea.vmem %s219_s6, 128 }
  0x37   : > { %p377_p11 = scmp.ne.s32.totalorder %s219_s6, %s376_s26  ;;  %p625_p12 = scmp.ne.s32.totalorder %s619_s24, 0 }
  0x38   : > { %v202_v4 = vadd.f32 %v297_v2, %v194_v3  ;;  %s443_s27 = smov [#allocation5]  }
  0x39   : > { %p378_p13 = pnand %p377_p11, %p625_p12  ;;  %s380_s28 = sshll.u32 %s443_s27, 4  ;;  %s381_s28 = int_to_ptr.vmem [resolvable:$false] %s380_s28 }
  0x3a   : > { %203 = vst [vmem:[%s185_s4] sm:$0xff] %v202_v4  ;;  %s382_s30 = scalar_lea.vmem %s381_s28, 256  ;;  %p383_p3 = scmp.lt.s32.totalorder %s219_s6, %s381_s28 }
  0x3b   : > { %p379_p1 = pneg %p378_p13  ;;  %p384_p5 = scmp.lt.s32.totalorder %s382_s30, %s376_s26 }
  0x3d   : > { %p385_p8 = por %p384_p5, %p383_p3 }
  0x3f   : > { %p386_p10 = pnand %p385_p8, %p379_p1 }
  0x41   : > { %389 = shalt.err (!%p386_p10)
}
  0x42   : > { %s390_s16 = scalar_lea.hbm %s216_s20, 128  ;;  %s394_s9 = scalar_lea.hbm %s614_s3, 256 }
  0x43   : > { %p391_p2 = scmp.ne.s32.totalorder %s216_s20, %s390_s16  ;;  %p395_p7 = scmp.lt.s32.totalorder %s216_s20, %s614_s3 }
  0x44   : > { %p396_p0 = scmp.lt.s32.totalorder %s394_s9, %s390_s16 }
  0x45   : > { %p392_p4 = pnand %p391_p2, %p625_p12 }
  0x46   : > { %p397_p6 = por %p396_p0, %p395_p7 }
  0x47   : > { %p393_p9 = pneg %p392_p4 }
  0x49   : > { %p398_p11 = pnand %p397_p6, %p393_p9 }
  0x4b   : > { %401 = shalt.err (!%p398_p11)
}
  0x4c   : > { %304 = dma.vmem_to_hbm [thread:$0]  (%p625_p12), %s219_s6, 128, %s216_s20, %s205_s22  }
  0x4d PF: > { %s230_s8 = sand.u32 1, %s428_s12   ;;  %p626_p13 = scmp.ne.s32.totalorder %s620_s25, 0 }
  0x4e   : > { %p627_p1 = scmp.ge.s32.totalorder %s440_s15, 2  ;;  %s231_s10 = scalar_lea.sflag [#allocation4], %s230_s8 }
  0x50   : > { %p311_p3 = pnand %p627_p1, %p626_p13 }
  0x52   : > { %p312_p5 = pneg %p311_p3 }
  0x54   : > { %423 = dma.done.wait (%p312_p5), %s231_s10, 128  }
  0x55   : > { %425 = vsyncadd (%p312_p5), %s231_s10, 4294967168  ;;  %p16_p8 = scmp.ge.s32.totalorder %s489_s18, 4   ;;  %s628_s12 = smov %s432_s13 }
  0x56   : > { %s629_s13 = smov %s436_s14  ;;  %s630_s14 = smov %s501_s21 }
  0x57   : > { %s631_s15 = smov %s489_s18  ;;  %18 = sbr.rel (!%p16_p8) target bundleno = 5 (0x5), region = 77 }
  0x5c   :  { %236 = vsyncpa [#allocation3], 1 }
  0x5d   :  { %238 = vsyncpa [#allocation3 + $0x1], 1 }
  0x5e   :  { %239 = vsyncpa [#allocation4], 1 }
  0x5f   :  { %241 = vsyncpa [#allocation4 + $0x1], 1 }

</bundles_post_ra>
